<compile_context>
chip_gen: v5e
topology: v5e:2x2
jax: 0.10.0
libtpu: 0.0.40
codegen_flags: <defaults>
</compile_context>

<pallas_src>
import functools

import jax
import jax.numpy as jnp
from jax.experimental import pallas as pl
from jax.experimental.pallas import tpu as pltpu


def decoder_kernel(z_ref, w3_ref, b3_ref, w4_ref, b4_ref, w5_ref, b5_ref, o_ref):
    # fc3 + relu  (bf16 operands, f32 accumulation on the MXU)
    h = jnp.dot(z_ref[...].astype(jnp.bfloat16), w3_ref[...],
                preferred_element_type=jnp.float32)
    h = jnp.maximum(h + b3_ref[...], 0.0)
    # fc4 + relu
    h = jnp.dot(h.astype(jnp.bfloat16), w4_ref[...],
                preferred_element_type=jnp.float32)
    h = jnp.maximum(h + b4_ref[...], 0.0)
    # fc5 + sigmoid
    y = jnp.dot(h.astype(jnp.bfloat16), w5_ref[...],
                preferred_element_type=jnp.float32)
    o_ref[...] = jax.nn.sigmoid(y + b5_ref[...]).astype(o_ref.dtype)


def _round_up(x, m):
    return (x + m - 1) // m * m


def decoder_forward(z, params, *, max_tb=256):
    """z: [B, latent_dim] float32 -> [B, image_dim] float32."""
    w3, b3, w4, b4, w5, b5 = params
    B, latent_dim = z.shape
    image_dim = w5.shape[1]

    # Lane-dense output: pad the output feature dim (and w5/b5) to 128*k.
    out_pad = _round_up(image_dim, 128)
    if out_pad != image_dim:
        w5 = jnp.pad(w5, ((0, 0), (0, out_pad - image_dim)))
        b5 = jnp.pad(b5, ((0, 0), (0, out_pad - image_dim)))

    # Batch tile: at most `max_tb` rows, always a multiple of 8 (sublane),
    # without over-padding tiny batches. Pad B up to a multiple of TB.
    tb = min(max_tb, _round_up(B, 8))
    b_pad = _round_up(B, tb)
    if b_pad != B:
        z = jnp.pad(z, ((0, b_pad - B), (0, 0)))

    grid = (b_pad // tb,)

    const = lambda shape: pl.BlockSpec(shape, lambda i: (0, 0))  # VMEM-resident

    out = pl.pallas_call(
        decoder_kernel,
        out_shape=jax.ShapeDtypeStruct((b_pad, out_pad), jnp.float32),
        grid=grid,
        in_specs=[
            pl.BlockSpec((tb, latent_dim), lambda i: (i, 0)),  # z rows
            const(w3.shape), const(b3.shape),
            const(w4.shape), const(b4.shape),
            const(w5.shape), const(b5.shape),
        ],
        out_specs=pl.BlockSpec((tb, out_pad), lambda i: (i, 0)),
        compiler_params=pltpu.CompilerParams(
            dimension_semantics=("parallel",),   # shard rows across TCs (v7x)
            vmem_limit_bytes=64 << 20,
        ),
    )(z, w3, b3, w4, b4, w5, b5)

    return out[:B, :image_dim]


def init_decoder_params(key, latent_dim, image_dim):
    """Deterministic init mirroring nn.Linear default (uniform +/- 1/sqrt(fan_in)).

    Weights are stored [in, out] in bfloat16; biases [1, out] in float32.
    """
    dims = [(latent_dim, 256), (256, 512), (512, image_dim)]
    params = []
    for (fan_in, fan_out) in dims:
        key, kw, kb = jax.random.split(key, 3)
        bound = 1.0 / (fan_in ** 0.5)
        w = jax.random.uniform(kw, (fan_in, fan_out), jnp.float32, -bound, bound)
        b = jax.random.uniform(kb, (1, fan_out), jnp.float32, -bound, bound)
        params += [w.astype(jnp.bfloat16), b]
    return tuple(params)


def decoder_reference(z, params):
    """Pure-JAX reference with the same bf16-operand / f32-accum cast pattern."""
    w3, b3, w4, b4, w5, b5 = params
    bf = jnp.bfloat16
    h = jax.nn.relu(jnp.dot(z.astype(bf), w3, preferred_element_type=jnp.float32) + b3)
    h = jax.nn.relu(jnp.dot(h.astype(bf), w4, preferred_element_type=jnp.float32) + b4)
    return jax.nn.sigmoid(jnp.dot(h.astype(bf), w5, preferred_element_type=jnp.float32) + b5)


if __name__ == "__main__":
    latent_dim = 32
    image_dim = 200   # deliberately not a multiple of 128 -> exercises lane padding

    key = jax.random.PRNGKey(0)
    key, kz1, kz2 = jax.random.split(key, 3)
    params = init_decoder_params(key, latent_dim, image_dim)

    run = jax.jit(functools.partial(decoder_forward, max_tb=256))

    # Case 1: tiny batch (single grid step, TB = 8).
    z_small = jax.random.normal(kz1, (8, latent_dim), jnp.float32)
    out_small = jax.block_until_ready(run(z_small, params))
    ref_small = decoder_reference(z_small, params)
    assert out_small.shape == (8, image_dim)
    assert jnp.allclose(out_small, ref_small, atol=2e-2, rtol=2e-2)

    # Case 2: larger batch -> row padding + multi-step parallel grid (TB = 256).
    z_big = jax.random.normal(kz2, (300, latent_dim), jnp.float32)
    out_big = jax.block_until_ready(run(z_big, params))
    ref_big = decoder_reference(z_big, params)
    assert out_big.shape == (300, image_dim)
    assert jnp.allclose(out_big, ref_big, atol=2e-2, rtol=2e-2)

    print("KERNEL_OK")
</pallas_src>

<mosaic_0001>
module attributes {stable_mosaic.version = 11 : i64} {
  func.func @decoder_kernel(%arg0: i32, %arg1: memref<8x32xf32, #tpu.memory_space<vmem>>, %arg2: memref<32x256xbf16, #tpu.memory_space<vmem>>, %arg3: memref<1x256xf32, #tpu.memory_space<vmem>>, %arg4: memref<256x512xbf16, #tpu.memory_space<vmem>>, %arg5: memref<1x512xf32, #tpu.memory_space<vmem>>, %arg6: memref<512x256xbf16, #tpu.memory_space<vmem>>, %arg7: memref<1x256xf32, #tpu.memory_space<vmem>>, %arg8: memref<8x256xf32, #tpu.memory_space<vmem>>) attributes {dimension_semantics = [#tpu.dimension_semantics<parallel>], iteration_bounds = array<i64: 1>, scalar_prefetch = 0 : i64, scratch_operands = 0 : i64, tpu.core_type = #tpu.core_type<tc>, window_params = [{transform_indices = @transform_0, window_bounds = array<i64: 8, 32>}, {pipeline_mode = #tpu.pipeline_mode<synchronous>, transform_indices = @transform_1, window_bounds = array<i64: 32, 256>}, {pipeline_mode = #tpu.pipeline_mode<synchronous>, transform_indices = @transform_2, window_bounds = array<i64: 1, 256>}, {pipeline_mode = #tpu.pipeline_mode<synchronous>, transform_indices = @transform_3, window_bounds = array<i64: 256, 512>}, {pipeline_mode = #tpu.pipeline_mode<synchronous>, transform_indices = @transform_4, window_bounds = array<i64: 1, 512>}, {pipeline_mode = #tpu.pipeline_mode<synchronous>, transform_indices = @transform_5, window_bounds = array<i64: 512, 256>}, {pipeline_mode = #tpu.pipeline_mode<synchronous>, transform_indices = @transform_6, window_bounds = array<i64: 1, 256>}, {transform_indices = @transform_7, window_bounds = array<i64: 8, 256>}]} {
    %c0 = arith.constant 0 : index
    %c0_0 = arith.constant 0 : index
    %0 = vector.load %arg1[%c0, %c0_0] : memref<8x32xf32, #tpu.memory_space<vmem>>, vector<8x32xf32>
    %1 = arith.truncf %0 : vector<8x32xf32> to vector<8x32xbf16>
    %c0_1 = arith.constant 0 : index
    %c0_2 = arith.constant 0 : index
    %2 = vector.load %arg2[%c0_1, %c0_2] : memref<32x256xbf16, #tpu.memory_space<vmem>>, vector<32x256xbf16>
    %cst = arith.constant dense<0.000000e+00> : vector<8x256xf32>
    %3 = tpu.matmul %1, %2, %cst {dimension_numbers = #tpu.dot_dimension_numbers<[1], [0], [0], [1], [0, 0, 1, 1], [], []>} : vector<8x32xbf16>, vector<32x256xbf16>, vector<8x256xf32> -> vector<8x256xf32>
    %c0_3 = arith.constant 0 : index
    %c0_4 = arith.constant 0 : index
    %4 = vector.load %arg3[%c0_3, %c0_4] : memref<1x256xf32, #tpu.memory_space<vmem>>, vector<1x256xf32>
    %5 = vector.broadcast %4 : vector<1x256xf32> to vector<8x256xf32>
    %6 = arith.addf %3, %5 : vector<8x256xf32>
    %cst_5 = arith.constant 0.000000e+00 : f32
    %7 = vector.broadcast %cst_5 : f32 to vector<8x256xf32>
    %8 = arith.maximumf %6, %7 : vector<8x256xf32>
    %9 = arith.truncf %8 : vector<8x256xf32> to vector<8x256xbf16>
    %c0_6 = arith.constant 0 : index
    %c0_7 = arith.constant 0 : index
    %10 = vector.load %arg4[%c0_6, %c0_7] : memref<256x512xbf16, #tpu.memory_space<vmem>>, vector<256x512xbf16>
    %cst_8 = arith.constant dense<0.000000e+00> : vector<8x512xf32>
    %11 = tpu.matmul %9, %10, %cst_8 {dimension_numbers = #tpu.dot_dimension_numbers<[1], [0], [0], [1], [0, 0, 1, 1], [], []>} : vector<8x256xbf16>, vector<256x512xbf16>, vector<8x512xf32> -> vector<8x512xf32>
    %c0_9 = arith.constant 0 : index
    %c0_10 = arith.constant 0 : index
    %12 = vector.load %arg5[%c0_9, %c0_10] : memref<1x512xf32, #tpu.memory_space<vmem>>, vector<1x512xf32>
    %13 = vector.broadcast %12 : vector<1x512xf32> to vector<8x512xf32>
    %14 = arith.addf %11, %13 : vector<8x512xf32>
    %cst_11 = arith.constant 0.000000e+00 : f32
    %15 = vector.broadcast %cst_11 : f32 to vector<8x512xf32>
    %16 = arith.maximumf %14, %15 : vector<8x512xf32>
    %17 = arith.truncf %16 : vector<8x512xf32> to vector<8x512xbf16>
    %c0_12 = arith.constant 0 : index
    %c0_13 = arith.constant 0 : index
    %18 = vector.load %arg6[%c0_12, %c0_13] : memref<512x256xbf16, #tpu.memory_space<vmem>>, vector<512x256xbf16>
    %cst_14 = arith.constant dense<0.000000e+00> : vector<8x256xf32>
    %19 = tpu.matmul %17, %18, %cst_14 {dimension_numbers = #tpu.dot_dimension_numbers<[1], [0], [0], [1], [0, 0, 1, 1], [], []>} : vector<8x512xbf16>, vector<512x256xbf16>, vector<8x256xf32> -> vector<8x256xf32>
    %c0_15 = arith.constant 0 : index
    %c0_16 = arith.constant 0 : index
    %20 = vector.load %arg7[%c0_15, %c0_16] : memref<1x256xf32, #tpu.memory_space<vmem>>, vector<1x256xf32>
    %21 = vector.broadcast %20 : vector<1x256xf32> to vector<8x256xf32>
    %22 = arith.addf %19, %21 : vector<8x256xf32>
    %23 = arith.negf %22 : vector<8x256xf32>
    %24 = math.exp %23 : vector<8x256xf32>
    %cst_17 = arith.constant 1.000000e+00 : f32
    %25 = vector.broadcast %cst_17 : f32 to vector<8x256xf32>
    %26 = arith.addf %25, %24 : vector<8x256xf32>
    %27 = arith.divf %25, %26 : vector<8x256xf32>
    %c0_18 = arith.constant 0 : index
    %c0_19 = arith.constant 0 : index
    %28 = vector.load %arg8[%c0_18, %c0_19] : memref<8x256xf32, #tpu.memory_space<vmem>>, vector<8x256xf32>
    tpu.vector_store %arg8[%c0_18, %c0_19], %27 {strides = array<i32>} : memref<8x256xf32, #tpu.memory_space<vmem>>, vector<8x256xf32>,
    return
  }
  func.func @transform_0(%arg0: i32) -> (i32, i32) {
    %c0_i32 = arith.constant 0 : i32
    %c0_i32_0 = arith.constant 0 : i32
    return %arg0, %c0_i32 : i32, i32
  }
  func.func @transform_1(%arg0: i32) -> (i32, i32) {
    %c0_i32 = arith.constant 0 : i32
    %c0_i32_0 = arith.constant 0 : i32
    %c0_i32_1 = arith.constant 0 : i32
    return %c0_i32, %c0_i32_0 : i32, i32
  }
  func.func @transform_2(%arg0: i32) -> (i32, i32) {
    %c0_i32 = arith.constant 0 : i32
    %c0_i32_0 = arith.constant 0 : i32
    %c0_i32_1 = arith.constant 0 : i32
    return %c0_i32, %c0_i32_0 : i32, i32
  }
  func.func @transform_3(%arg0: i32) -> (i32, i32) {
    %c0_i32 = arith.constant 0 : i32
    %c0_i32_0 = arith.constant 0 : i32
    %c0_i32_1 = arith.constant 0 : i32
    return %c0_i32, %c0_i32_0 : i32, i32
  }
  func.func @transform_4(%arg0: i32) -> (i32, i32) {
    %c0_i32 = arith.constant 0 : i32
    %c0_i32_0 = arith.constant 0 : i32
    %c0_i32_1 = arith.constant 0 : i32
    return %c0_i32, %c0_i32_0 : i32, i32
  }
  func.func @transform_5(%arg0: i32) -> (i32, i32) {
    %c0_i32 = arith.constant 0 : i32
    %c0_i32_0 = arith.constant 0 : i32
    %c0_i32_1 = arith.constant 0 : i32
    return %c0_i32, %c0_i32_0 : i32, i32
  }
  func.func @transform_6(%arg0: i32) -> (i32, i32) {
    %c0_i32 = arith.constant 0 : i32
    %c0_i32_0 = arith.constant 0 : i32
    %c0_i32_1 = arith.constant 0 : i32
    return %c0_i32, %c0_i32_0 : i32, i32
  }
  func.func @transform_7(%arg0: i32) -> (i32, i32) {
    %c0_i32 = arith.constant 0 : i32
    %c0_i32_0 = arith.constant 0 : i32
    return %arg0, %c0_i32 : i32, i32
  }
}

</mosaic_0001>

<bundles_post_ra>
// kernel: decoder_forward.1
= control target key start
LH: loop header
LB: loop body
LE: loop exit
PB: predicated region body
PF: predicated region fallthrough
CT: control target
= control target key end

     0   :  { %vm60_vm0 = vcmask 261120   ;;  %s2717_s0 = inlined_call_operand.vmem [shape: f32[8,32], index: 0, kind: input, shape index: {}]   ;;  %s2718_s1 = inlined_call_operand.vmem [shape: bf16[32,256], index: 1, kind: input, shape index: {}]   ;;  %s2719_s2 = inlined_call_operand.vmem [shape: f32[1,256], index: 2, kind: input, shape index: {}]   ;;  %s2720_s3 = inlined_call_operand.vmem [shape: bf16[256,512], index: 3, kind: input, shape index: {}]   ;;  %s2721_s4 = inlined_call_operand.vmem [shape: f32[1,512], index: 4, kind: input, shape index: {}]   ;;  %s2722_s5 = inlined_call_operand.vmem [shape: bf16[512,256], index: 5, kind: input, shape index: {}]   ;;  %s2723_s6 = inlined_call_operand.vmem [shape: f32[1,256], index: 6, kind: input, shape index: {}]   ;;  %s2724_s7 = inlined_call_operand.hbm [shape: f32[8,256], index: 7, kind: output, shape index: {}]  }
   0x1   :  { %v1160_v0 = vld [vmem:[%s2718_s1 + $0x10] sm:$0xf]  ;;  %v1685_v1 = vld [vmem:[%s2718_s1 + $0x14] sm:$0xf0]  ;;  %v1684_v2 = vld [vmem:[%s2718_s1 + $0x14] sm:$0xf] }
   0x2   :  { %v1161_v3 = vor.u32 %v1685_v1, %v1160_v0  ;;  %v1162_v4 = vld [vmem:[%s2718_s1 + $0x18] sm:$0xf0]  ;;  %v1152_v5 = vld [vmem:[%s2718_s1] sm:$0xf]  ;;  %v1683_v6 = vld [vmem:[%s2718_s1 + $0x4] sm:$0xf0] }
   0x3   :  { %v1165_v7 = vor.u32 %v1684_v2, %v1162_v4  ;;  %v1682_v8 = vld [vmem:[%s2718_s1 + $0x4] sm:$0xf]  ;;  %v1154_v9 = vld [vmem:[%s2718_s1 + $0x8] sm:$0xf0]  ;;  %v1153_v11 = vor.u32 %v1683_v6, %v1152_v5  ;;  %v1282_v12 = vld [vmem:[%s2720_s3 + $0xe0] sm:$0xf] }
   0x4   :  { %v28_v10 = vld [vmem:[%s2717_s0] sm:$0xff]  ;;  %70 = vmatpush.bf16.msra.mxu0 %v1161_v3  ;;  %v1716_v13 = vld [vmem:[%s2720_s3 + $0xec] sm:$0xf0]  ;;  %v1157_v15 = vor.u32 %v1682_v8, %v1154_v9  ;;  %v1284_v19 = vld [vmem:[%s2720_s3 + $0xf0] sm:$0xf0] }
   0x5   :  { %v1410_v14 = vld [vmem:[%s2720_s3 + $0x1e0] sm:$0xf]  ;;  %83 = vmatpush.bf16.msra.mxu1 %v1165_v7  ;;  %v1283_v16 = vor.u32 %v1716_v13, %v1282_v12  ;;  %v1748_v17 = vld [vmem:[%s2720_s3 + $0x1ec] sm:$0xf0]  ;;  %v1714_v18 = vld [vmem:[%s2720_s3 + $0xe4] sm:$0xf]  ;;  %v29_v25 = vpack.c.bf16 %v28_v10, %v28_v10 }
   0x6   :  { %v1411_v20 = vor.u32 %v1748_v17, %v1410_v14  ;;  %v1287_v21 = vor.u32 %v1714_v18, %v1284_v19  ;;  %v1746_v22 = vld [vmem:[%s2720_s3 + $0x1e4] sm:$0xf]  ;;  %v1412_v23 = vld [vmem:[%s2720_s3 + $0x1f0] sm:$0xf0]  ;;  %v1266_v24 = vld [vmem:[%s2720_s3 + $0xc0] sm:$0xf] }
   0x7   :  { %488 = vmatpush.bf16.msra.mxu2 %v1283_v16  ;;  %v1415_v26 = vor.u32 %v1746_v22, %v1412_v23  ;;  %v1712_v27 = vld [vmem:[%s2720_s3 + $0xcc] sm:$0xf0]  ;;  %v1394_v28 = vld [vmem:[%s2720_s3 + $0x1c0] sm:$0xf]  ;;  %v1710_v32 = vld [vmem:[%s2720_s3 + $0xc4] sm:$0xf] }
   0x8   :  { %v1744_v29 = vld [vmem:[%s2720_s3 + $0x1cc] sm:$0xf0]  ;;  %71 = vmatpush.bf16.msra.mxu0 %v1153_v11  ;;  %501 = vmatpush.bf16.msra.mxu3 %v1411_v20  ;;  %v1267_v30 = vor.u32 %v1712_v27, %v1266_v24  ;;  %v1268_v33 = vld [vmem:[%s2720_s3 + $0xd0] sm:$0xf0]  ;;  %v1742_v34 = vld [vmem:[%s2720_s3 + $0x1c4] sm:$0xf] }
   0x9   :  { %v1395_v31 = vor.u32 %v1744_v29, %v1394_v28  ;;  %84 = vmatpush.bf16.msra.mxu1 %v1157_v15  ;;  %v1271_v35 = vor.u32 %v1710_v32, %v1268_v33  ;;  %v1396_v36 = vld [vmem:[%s2720_s3 + $0x1d0] sm:$0xf0]  ;;  %v1250_v37 = vld [vmem:[%s2720_s3 + $0xa0] sm:$0xf]  ;;  %v1708_v38 = vld [vmem:[%s2720_s3 + $0xac] sm:$0xf0] }
   0xa   :  { %v1399_v39 = vor.u32 %v1742_v34, %v1396_v36  ;;  %v1378_v40 = vld [vmem:[%s2720_s3 + $0x1a0] sm:$0xf]  ;;  %v1740_v41 = vld [vmem:[%s2720_s3 + $0x1ac] sm:$0xf0]  ;;  %v1706_v42 = vld [vmem:[%s2720_s3 + $0xa4] sm:$0xf]  ;;  %v1251_v43 = vor.u32 %v1708_v38, %v1250_v37 }
   0xb   :  { %1166 = vmatmul.msk.bf16.vlgmr.msra.gmra.mxu0 %vm60_vm0, %v29_v25  ;;  %489 = vmatpush.bf16.msra.mxu2 %v1267_v30  ;;  %v1252_v44 = vld [vmem:[%s2720_s3 + $0xb0] sm:$0xf0]  ;;  %v1738_v45 = vld [vmem:[%s2720_s3 + $0x1a4] sm:$0xf]  ;;  %v1379_v47 = vor.u32 %v1740_v41, %v1378_v40  ;;  %v1234_v48 = vld [vmem:[%s2720_s3 + $0x80] sm:$0xf] }
   0xc   :  { %514 = vmatpush.bf16.msrb.mxu0 %v1287_v21  ;;  %v1380_v46 = vld [vmem:[%s2720_s3 + $0x1b0] sm:$0xf0]  ;;  %1167 = vmatmul.msk.bf16.vlgmr.msra.gmra.mxu1 %vm60_vm0, %v29_v25  ;;  %v1704_v49 = vld [vmem:[%s2720_s3 + $0x8c] sm:$0xf0]  ;;  %v1255_v50 = vor.u32 %v1706_v42, %v1252_v44  ;;  %v1362_v51 = vld [vmem:[%s2720_s3 + $0x180] sm:$0xf] }
   0xd   :  { %527 = vmatpush.bf16.msrb.mxu1 %v1415_v26  ;;  %502 = vmatpush.bf16.msra.mxu3 %v1395_v31  ;;  %v1736_v52 = vld [vmem:[%s2720_s3 + $0x18c] sm:$0xf0]  ;;  %v1383_v53 = vor.u32 %v1738_v45, %v1380_v46  ;;  %v1702_v54 = vld [vmem:[%s2720_s3 + $0x84] sm:$0xf]  ;;  %v1236_v55 = vld [vmem:[%s2720_s3 + $0x90] sm:$0xf0]  ;;  %v1235_v56 = vor.u32 %v1704_v49, %v1234_v48 }
   0xe   :  { %v1734_v57 = vld [vmem:[%s2720_s3 + $0x184] sm:$0xf]  ;;  %v1364_v58 = vld [vmem:[%s2720_s3 + $0x190] sm:$0xf0]  ;;  %v1363_v59 = vor.u32 %v1736_v52, %v1362_v51  ;;  %v1218_v60 = vld [vmem:[%s2720_s3 + $0x60] sm:$0xf]  ;;  %v1239_v62 = vor.u32 %v1702_v54, %v1236_v55 }
   0xf   :  { %490 = vmatpush.bf16.msra.mxu2 %v1251_v43  ;;  %v1700_v61 = vld [vmem:[%s2720_s3 + $0x6c] sm:$0xf0]  ;;  %v1346_v63 = vld [vmem:[%s2720_s3 + $0x160] sm:$0xf]  ;;  %v1367_v1 = vor.u32 %v1734_v57, %v1364_v58  ;;  %v1698_v2 = vld [vmem:[%s2720_s3 + $0x64] sm:$0xf] }
  0x10   :  { %515 = vmatpush.bf16.msrb.mxu0 %v1271_v35  ;;  %v1732_v0 = vld [vmem:[%s2720_s3 + $0x16c] sm:$0xf0]  ;;  %v1220_v3 = vld [vmem:[%s2720_s3 + $0x70] sm:$0xf0]  ;;  %v1219_v4 = vor.u32 %v1700_v61, %v1218_v60  ;;  %v1730_v5 = vld [vmem:[%s2720_s3 + $0x164] sm:$0xf] }
  0x11   :  { %528 = vmatpush.bf16.msrb.mxu1 %v1399_v39  ;;  %503 = vmatpush.bf16.msra.mxu3 %v1379_v47  ;;  %v1348_v6 = vld [vmem:[%s2720_s3 + $0x170] sm:$0xf0]  ;;  %v1347_v7 = vor.u32 %v1732_v0, %v1346_v63  ;;  %v1202_v8 = vld [vmem:[%s2720_s3 + $0x40] sm:$0xf]  ;;  %v1696_v9 = vld [vmem:[%s2720_s3 + $0x4c] sm:$0xf0]  ;;  %v1223_v10 = vor.u32 %v1698_v2, %v1220_v3 }
  0x12   :  { %v1330_v11 = vld [vmem:[%s2720_s3 + $0x140] sm:$0xf]  ;;  %v1728_v12 = vld [vmem:[%s2720_s3 + $0x14c] sm:$0xf0]  ;;  %v1351_v13 = vor.u32 %v1730_v5, %v1348_v6  ;;  %v1694_v14 = vld [vmem:[%s2720_s3 + $0x44] sm:$0xf]  ;;  %v1203_v16 = vor.u32 %v1696_v9, %v1202_v8 }
  0x13   :  { %491 = vmatpush.bf16.msra.mxu2 %v1235_v56  ;;  %v1204_v15 = vld [vmem:[%s2720_s3 + $0x50] sm:$0xf0]  ;;  %v1726_v17 = vld [vmem:[%s2720_s3 + $0x144] sm:$0xf]  ;;  %v1331_v19 = vor.u32 %v1728_v12, %v1330_v11  ;;  %v1186_v20 = vld [vmem:[%s2720_s3 + $0x20] sm:$0xf] }
  0x14   :  { %516 = vmatpush.bf16.msrb.mxu0 %v1255_v50  ;;  %v1332_v18 = vld [vmem:[%s2720_s3 + $0x150] sm:$0xf0]  ;;  %v1692_v21 = vld [vmem:[%s2720_s3 + $0x2c] sm:$0xf0]  ;;  %v1207_v22 = vor.u32 %v1694_v14, %v1204_v15  ;;  %v1314_v23 = vld [vmem:[%s2720_s3 + $0x120] sm:$0xf] }
  0x15   :  { %529 = vmatpush.bf16.msrb.mxu1 %v1383_v53  ;;  %504 = vmatpush.bf16.msra.mxu3 %v1363_v59  ;;  %v1724_v24 = vld [vmem:[%s2720_s3 + $0x12c] sm:$0xf0]  ;;  %v1690_v25 = vld [vmem:[%s2720_s3 + $0x24] sm:$0xf]  ;;  %v1335_v26 = vor.u32 %v1726_v17, %v1332_v18  ;;  %v1188_v27 = vld [vmem:[%s2720_s3 + $0x30] sm:$0xf0]  ;;  %v1187_v30 = vor.u32 %v1692_v21, %v1186_v20 }
  0x16   :  { %v1722_v28 = vld [vmem:[%s2720_s3 + $0x124] sm:$0xf]  ;;  %v1316_v29 = vld [vmem:[%s2720_s3 + $0x130] sm:$0xf0]  ;;  %v1170_v31 = vld [vmem:[%s2720_s3] sm:$0xf]  ;;  %v1315_v34 = vor.u32 %v1724_v24, %v1314_v23  ;;  %v1191_v38 = vor.u32 %v1690_v25, %v1188_v27 }
  0x17   :  { %492 = vmatpush.bf16.msra.mxu2 %v1219_v4  ;;  %v1688_v32 = vld [vmem:[%s2720_s3 + $0xc] sm:$0xf0]  ;;  %v1298_v33 = vld [vmem:[%s2720_s3 + $0x100] sm:$0xf]  ;;  %v1686_v36 = vld [vmem:[%s2720_s3 + $0x4] sm:$0xf]  ;;  %v1319_v42 = vor.u32 %v1722_v28, %v1316_v29 }
  0x18   :  { %517 = vmatpush.bf16.msrb.mxu0 %v1239_v62  ;;  %v1720_v35 = vld [vmem:[%s2720_s3 + $0x10c] sm:$0xf0]  ;;  %v1172_v37 = vld [vmem:[%s2720_s3 + $0x10] sm:$0xf0]  ;;  %v1718_v39 = vld [vmem:[%s2720_s3 + $0x104] sm:$0xf]  ;;  %v1171_v46 = vor.u32 %v1688_v32, %v1170_v31 }
  0x19   :  { %530 = vmatpush.bf16.msrb.mxu1 %v1367_v1  ;;  %505 = vmatpush.bf16.msra.mxu3 %v1347_v7  ;;  %v1290_v40 = vld [vmem:[%s2720_s3 + $0xe8] sm:$0xf]  ;;  %v1717_v41 = vld [vmem:[%s2720_s3 + $0xf4] sm:$0xf0]  ;;  %v1300_v43 = vld [vmem:[%s2720_s3 + $0x110] sm:$0xf0] }
  0x1a   :  { %v1418_v44 = vld [vmem:[%s2720_s3 + $0x1e8] sm:$0xf]  ;;  %v1749_v45 = vld [vmem:[%s2720_s3 + $0x1f4] sm:$0xf0]  ;;  %v1715_v47 = vld [vmem:[%s2720_s3 + $0xec] sm:$0xf] }
  0x1b   :  { %493 = vmatpush.bf16.msra.mxu2 %v1203_v16  ;;  %v1292_v48 = vld [vmem:[%s2720_s3 + $0xf8] sm:$0xf0] }
  0x1c   :  { %518 = vmatpush.bf16.msrb.mxu0 %v1223_v10 }
  0x1d   :  { %531 = vmatpush.bf16.msrb.mxu1 %v1351_v13  ;;  %506 = vmatpush.bf16.msra.mxu3 %v1331_v19 }
  0x1f   :  { %494 = vmatpush.bf16.msra.mxu2 %v1187_v30 }
  0x20   :  { %519 = vmatpush.bf16.msrb.mxu0 %v1207_v22 }
  0x21   :  { %532 = vmatpush.bf16.msrb.mxu1 %v1335_v26 }
  0x22   :  { %12 = vsyncpa [#allocation3], 0  ;;  %507 = vmatpush.bf16.msra.mxu3 %v1315_v34  ;;  %v1299_v49 = vor.u32 %v1720_v35, %v1298_v33  ;;  %v1291_v50 = vor.u32 %v1717_v41, %v1290_v40  ;;  %v1747_v51 = vld [vmem:[%s2720_s3 + $0x1ec] sm:$0xf]  ;;  %v1420_v52 = vld [vmem:[%s2720_s3 + $0x1f8] sm:$0xf0]  ;;  %v1175_v53 = vor.u32 %v1686_v36, %v1172_v37  ;;  %v1419_v54 = vor.u32 %v1749_v45, %v1418_v44 }
  0x23   :  { %v1274_v55 = vld [vmem:[%s2720_s3 + $0xc8] sm:$0xf]  ;;  %v1713_v56 = vld [vmem:[%s2720_s3 + $0xd4] sm:$0xf0]  ;;  %v1303_v57 = vor.u32 %v1718_v39, %v1300_v43  ;;  %v1295_v58 = vor.u32 %v1715_v47, %v1292_v48  ;;  %495 = vmatpush.bf16.msra.mxu2 %v1171_v46  ;;  %v1423_v61 = vor.u32 %v1747_v51, %v1420_v52  ;;  %v1711_v62 = vld [vmem:[%s2720_s3 + $0xcc] sm:$0xf] }
  0x24   :  { %520 = vmatpush.bf16.msrb.mxu0 %v1191_v38  ;;  %v1402_v59 = vld [vmem:[%s2720_s3 + $0x1c8] sm:$0xf]  ;;  %v1745_v60 = vld [vmem:[%s2720_s3 + $0x1d4] sm:$0xf0]  ;;  %v1276_v63 = vld [vmem:[%s2720_s3 + $0xd8] sm:$0xf0]  ;;  %v1275_v0 = vor.u32 %v1713_v56, %v1274_v55 }
  0x25   :  { %533 = vmatpush.bf16.msrb.mxu1 %v1319_v42  ;;  %v1743_v1 = vld [vmem:[%s2720_s3 + $0x1cc] sm:$0xf]  ;;  %v1404_v2 = vld [vmem:[%s2720_s3 + $0x1d8] sm:$0xf0]  ;;  %v1403_v3 = vor.u32 %v1745_v60, %v1402_v59  ;;  %v1279_v4 = vor.u32 %v1711_v62, %v1276_v63  ;;  %v1258_v6 = vld [vmem:[%s2720_s3 + $0xa8] sm:$0xf] }
  0x26   :  { %508 = vmatpush.bf16.msra.mxu3 %v1299_v49  ;;  %v1407_v5 = vor.u32 %v1743_v1, %v1404_v2  ;;  %v1709_v7 = vld [vmem:[%s2720_s3 + $0xb4] sm:$0xf0]  ;;  %v1386_v8 = vld [vmem:[%s2720_s3 + $0x1a8] sm:$0xf]  ;;  %v1707_v11 = vld [vmem:[%s2720_s3 + $0xac] sm:$0xf] }
  0x27   :  { %540 = vmatpush.bf16.msrb.mxu2 %v1291_v50  ;;  %v1259_v9 = vor.u32 %v1709_v7, %v1258_v6  ;;  %v1741_v10 = vld [vmem:[%s2720_s3 + $0x1b4] sm:$0xf0]  ;;  %v1260_v12 = vld [vmem:[%s2720_s3 + $0xb8] sm:$0xf0]  ;;  %v1739_v15 = vld [vmem:[%s2720_s3 + $0x1ac] sm:$0xf] }
  0x28   :  { %521 = vmatpush.bf16.msrb.mxu0 %v1175_v53  ;;  %v1387_v13 = vor.u32 %v1741_v10, %v1386_v8  ;;  %v1263_v14 = vor.u32 %v1707_v11, %v1260_v12  ;;  %v1388_v16 = vld [vmem:[%s2720_s3 + $0x1b8] sm:$0xf0]  ;;  %v1242_v18 = vld [vmem:[%s2720_s3 + $0x88] sm:$0xf]  ;;  %v1705_v19 = vld [vmem:[%s2720_s3 + $0x94] sm:$0xf0] }
  0x29   :  { %534 = vmatpush.bf16.msrb.mxu1 %v1303_v57  ;;  %v1391_v17 = vor.u32 %v1739_v15, %v1388_v16  ;;  %v1370_v20 = vld [vmem:[%s2720_s3 + $0x188] sm:$0xf]  ;;  %v1243_v21 = vor.u32 %v1705_v19, %v1242_v18  ;;  %v1737_v22 = vld [vmem:[%s2720_s3 + $0x194] sm:$0xf0]  ;;  %v1703_v23 = vld [vmem:[%s2720_s3 + $0x8c] sm:$0xf] }
  0x2a   :  { %553 = vmatpush.bf16.msrb.mxu3 %v1419_v54  ;;  %v1244_v24 = vld [vmem:[%s2720_s3 + $0x98] sm:$0xf0]  ;;  %v1371_v25 = vor.u32 %v1737_v22, %v1370_v20  ;;  %v1735_v27 = vld [vmem:[%s2720_s3 + $0x18c] sm:$0xf]  ;;  %v1226_v30 = vld [vmem:[%s2720_s3 + $0x68] sm:$0xf] }
  0x2b   :  { %541 = vmatpush.bf16.msrb.mxu2 %v1275_v0  ;;  %v1247_v26 = vor.u32 %v1703_v23, %v1244_v24  ;;  %v1372_v28 = vld [vmem:[%s2720_s3 + $0x198] sm:$0xf0]  ;;  %v1701_v31 = vld [vmem:[%s2720_s3 + $0x74] sm:$0xf0]  ;;  %v1354_v32 = vld [vmem:[%s2720_s3 + $0x168] sm:$0xf] }
  0x2c   :  { %566 = vmatpush.bf16.msra.mxu0 %v1295_v58  ;;  %v1375_v29 = vor.u32 %v1735_v27, %v1372_v28  ;;  %v1227_v33 = vor.u32 %v1701_v31, %v1226_v30  ;;  %v1733_v34 = vld [vmem:[%s2720_s3 + $0x174] sm:$0xf0]  ;;  %v1699_v35 = vld [vmem:[%s2720_s3 + $0x6c] sm:$0xf]  ;;  %v1228_v36 = vld [vmem:[%s2720_s3 + $0x78] sm:$0xf0] }
  0x2d   :  { %579 = vmatpush.bf16.msra.mxu1 %v1423_v61  ;;  %v1355_v37 = vor.u32 %v1733_v34, %v1354_v32  ;;  %v1231_v38 = vor.u32 %v1699_v35, %v1228_v36  ;;  %v1731_v39 = vld [vmem:[%s2720_s3 + $0x16c] sm:$0xf]  ;;  %v1356_v40 = vld [vmem:[%s2720_s3 + $0x178] sm:$0xf0]  ;;  %v1210_v42 = vld [vmem:[%s2720_s3 + $0x48] sm:$0xf] }
  0x2e   :  { %554 = vmatpush.bf16.msrb.mxu3 %v1403_v3  ;;  %v1359_v41 = vor.u32 %v1731_v39, %v1356_v40  ;;  %v1697_v43 = vld [vmem:[%s2720_s3 + $0x54] sm:$0xf0]  ;;  %v1338_v44 = vld [vmem:[%s2720_s3 + $0x148] sm:$0xf]  ;;  %v1695_v47 = vld [vmem:[%s2720_s3 + $0x4c] sm:$0xf] }
  0x2f   :  { %542 = vmatpush.bf16.msrb.mxu2 %v1259_v9  ;;  %v1211_v45 = vor.u32 %v1697_v43, %v1210_v42  ;;  %v1729_v46 = vld [vmem:[%s2720_s3 + $0x154] sm:$0xf0]  ;;  %v1212_v48 = vld [vmem:[%s2720_s3 + $0x58] sm:$0xf0]  ;;  %v1727_v51 = vld [vmem:[%s2720_s3 + $0x14c] sm:$0xf] }
  0x30   :  { %567 = vmatpush.bf16.msra.mxu0 %v1279_v4  ;;  %v1339_v49 = vor.u32 %v1729_v46, %v1338_v44  ;;  %v1215_v50 = vor.u32 %v1695_v47, %v1212_v48  ;;  %v1340_v52 = vld [vmem:[%s2720_s3 + $0x158] sm:$0xf0]  ;;  %v1194_v53 = vld [vmem:[%s2720_s3 + $0x28] sm:$0xf]  ;;  %v1693_v55 = vld [vmem:[%s2720_s3 + $0x34] sm:$0xf0] }
  0x31   :  { %580 = vmatpush.bf16.msra.mxu1 %v1407_v5  ;;  %v1343_v54 = vor.u32 %v1727_v51, %v1340_v52  ;;  %v1322_v56 = vld [vmem:[%s2720_s3 + $0x128] sm:$0xf]  ;;  %v1725_v57 = vld [vmem:[%s2720_s3 + $0x134] sm:$0xf0]  ;;  %v1195_v58 = vor.u32 %v1693_v55, %v1194_v53  ;;  %v1691_v59 = vld [vmem:[%s2720_s3 + $0x2c] sm:$0xf] }
  0x32   :  { %555 = vmatpush.bf16.msrb.mxu3 %v1387_v13  ;;  %v1196_v60 = vld [vmem:[%s2720_s3 + $0x38] sm:$0xf0]  ;;  %v1723_v61 = vld [vmem:[%s2720_s3 + $0x12c] sm:$0xf]  ;;  %v1323_v62 = vor.u32 %v1725_v57, %v1322_v56  ;;  %v1178_v1 = vld [vmem:[%s2720_s3 + $0x8] sm:$0xf] }
  0x33   :  { %543 = vmatpush.bf16.msrb.mxu2 %v1243_v21  ;;  %v1199_v63 = vor.u32 %v1691_v59, %v1196_v60  ;;  %v1324_v0 = vld [vmem:[%s2720_s3 + $0x138] sm:$0xf0]  ;;  %v1689_v2 = vld [vmem:[%s2720_s3 + $0x14] sm:$0xf0]  ;;  %v1306_v4 = vld [vmem:[%s2720_s3 + $0x108] sm:$0xf] }
  0x34   :  { %568 = vmatpush.bf16.msra.mxu0 %v1263_v14  ;;  %v1327_v3 = vor.u32 %v1723_v61, %v1324_v0  ;;  %v1721_v5 = vld [vmem:[%s2720_s3 + $0x114] sm:$0xf0]  ;;  %v1687_v6 = vld [vmem:[%s2720_s3 + $0xc] sm:$0xf]  ;;  %v1180_v7 = vld [vmem:[%s2720_s3 + $0x18] sm:$0xf0]  ;;  %v1179_v10 = vor.u32 %v1689_v2, %v1178_v1 }
  0x35   :  { %581 = vmatpush.bf16.msra.mxu1 %v1391_v17  ;;  %v1719_v8 = vld [vmem:[%s2720_s3 + $0x10c] sm:$0xf]  ;;  %v1308_v9 = vld [vmem:[%s2720_s3 + $0x118] sm:$0xf0]  ;;  %v1307_v11 = vor.u32 %v1721_v5, %v1306_v4  ;;  %v1183_v12 = vor.u32 %v1687_v6, %v1180_v7  ;;  %v34_v14 = vld [vmem:[%s2719_s2] sm:$0x3] }
  0x36   :  { %556 = vmatpush.bf16.msrb.mxu3 %v1371_v25  ;;  %v1311_v13 = vor.u32 %v1719_v8, %v1308_v9  ;;  %v36_v15 = vperm.slane %v34_v14, 0  ;;  %v37_v16 = vperm.slane %v34_v14, 1  ;;  %v1546_v20 = vld [vmem:[%s2722_s5 + $0xf0] sm:$0xf]  ;;  %v1781_v21 = vld [vmem:[%s2722_s5 + $0xf4] sm:$0xf0] }
  0x37   :  { %544 = vmatpush.bf16.msrb.mxu2 %v1227_v33  ;;  %v1482_v22 = vld [vmem:[%s2722_s5 + $0x70] sm:$0xf]  ;;  %v1765_v24 = vld [vmem:[%s2722_s5 + $0x74] sm:$0xf0]  ;;  %v1547_v32 = vor.u32 %v1781_v21, %v1546_v20  ;;  %v1538_v33 = vld [vmem:[%s2722_s5 + $0xe0] sm:$0xf] }
  0x38   :  { %569 = vmatpush.bf16.msra.mxu0 %v1247_v26  ;;  %v1674_v25 = vld [vmem:[%s2722_s5 + $0x1f0] sm:$0xf]  ;;  %v1813_v26 = vld [vmem:[%s2722_s5 + $0x1f4] sm:$0xf0]  ;;  %v1779_v34 = vld [vmem:[%s2722_s5 + $0xe4] sm:$0xf0]  ;;  %v1483_v35 = vor.u32 %v1765_v24, %v1482_v22 }
  0x39   :  { %582 = vmatpush.bf16.msra.mxu1 %v1375_v29  ;;  %v1610_v28 = vld [vmem:[%s2722_s5 + $0x170] sm:$0xf]  ;;  %v1797_v29 = vld [vmem:[%s2722_s5 + $0x174] sm:$0xf0]  ;;  %v1675_v39 = vor.u32 %v1813_v26, %v1674_v25  ;;  %v1666_v40 = vld [vmem:[%s2722_s5 + $0x1e0] sm:$0xf]  ;;  %v1539_v47 = vor.u32 %v1779_v34, %v1538_v33 }
  0x3a   :  { %557 = vmatpush.bf16.msrb.mxu3 %v1355_v37  ;;  %v1474_v37 = vld [vmem:[%s2722_s5 + $0x60] sm:$0xf]  ;;  %v1811_v42 = vld [vmem:[%s2722_s5 + $0x1e4] sm:$0xf0]  ;;  %v1530_v48 = vld [vmem:[%s2722_s5 + $0xd0] sm:$0xf] }
  0x3b   :  { %545 = vmatpush.bf16.msrb.mxu2 %v1211_v45  ;;  %v1602_v43 = vld [vmem:[%s2722_s5 + $0x160] sm:$0xf]  ;;  %v1795_v44 = vld [vmem:[%s2722_s5 + $0x164] sm:$0xf0]  ;;  %v1466_v51 = vld [vmem:[%s2722_s5 + $0x50] sm:$0xf]  ;;  %v1667_v53 = vor.u32 %v1811_v42, %v1666_v40 }
  0x3c   :  { %570 = vmatpush.bf16.msra.mxu0 %v1231_v38  ;;  %v1763_v38 = vld [vmem:[%s2722_s5 + $0x64] sm:$0xf0]  ;;  %v1761_v52 = vld [vmem:[%s2722_s5 + $0x54] sm:$0xf0]  ;;  %v1603_v55 = vor.u32 %v1795_v44, %v1602_v43  ;;  %v1594_v57 = vld [vmem:[%s2722_s5 + $0x150] sm:$0xf] }
  0x3d   :  { %583 = vmatpush.bf16.msra.mxu1 %v1359_v41  ;;  %v1611_v41 = vor.u32 %v1797_v29, %v1610_v28  ;;  %v1809_v56 = vld [vmem:[%s2722_s5 + $0x1d4] sm:$0xf0]  ;;  %v1522_v60 = vld [vmem:[%s2722_s5 + $0xc0] sm:$0xf]  ;;  %v1775_v61 = vld [vmem:[%s2722_s5 + $0xc4] sm:$0xf0] }
  0x3e   :  { %558 = vmatpush.bf16.msrb.mxu3 %v1339_v49  ;;  %v1777_v49 = vld [vmem:[%s2722_s5 + $0xd4] sm:$0xf0]  ;;  %v1759_v0 = vld [vmem:[%s2722_s5 + $0x44] sm:$0xf0]  ;;  %v1650_v2 = vld [vmem:[%s2722_s5 + $0x1c0] sm:$0xf]  ;;  %v1523_v7 = vor.u32 %v1775_v61, %v1522_v60 }
  0x3f   :  { %546 = vmatpush.bf16.msrb.mxu2 %v1195_v58  ;;  %v1793_v58 = vld [vmem:[%s2722_s5 + $0x154] sm:$0xf0]  ;;  %v1531_v59 = vor.u32 %v1777_v49, %v1530_v48  ;;  %v1807_v4 = vld [vmem:[%s2722_s5 + $0x1c4] sm:$0xf0]  ;;  %v1586_v5 = vld [vmem:[%s2722_s5 + $0x140] sm:$0xf] }
  0x40   :  { %571 = vmatpush.bf16.msra.mxu0 %v1215_v50  ;;  %v1475_v50 = vor.u32 %v1763_v38, %v1474_v37  ;;  %v1791_v6 = vld [vmem:[%s2722_s5 + $0x144] sm:$0xf0]  ;;  %v1514_v8 = vld [vmem:[%s2722_s5 + $0xb0] sm:$0xf]  ;;  %v1442_v21 = vld [vmem:[%s2722_s5 + $0x20] sm:$0xf] }
  0x41   :  { %584 = vmatpush.bf16.msra.mxu1 %v1343_v54  ;;  %v1658_v54 = vld [vmem:[%s2722_s5 + $0x1d0] sm:$0xf]  ;;  %v1587_v14 = vor.u32 %v1791_v6, %v1586_v5  ;;  %v1771_v20 = vld [vmem:[%s2722_s5 + $0xa4] sm:$0xf0]  ;;  %v1753_v29 = vld [vmem:[%s2722_s5 + $0x14] sm:$0xf0] }
  0x42   :  { %559 = vmatpush.bf16.msrb.mxu3 %v1323_v62  ;;  %v1467_v62 = vor.u32 %v1761_v52, %v1466_v51  ;;  %v1659_v1 = vor.u32 %v1809_v56, %v1658_v54  ;;  %v1755_v22 = vld [vmem:[%s2722_s5 + $0x24] sm:$0xf0]  ;;  %v1498_v25 = vld [vmem:[%s2722_s5 + $0x90] sm:$0xf]  ;;  %v1426_v34 = vld [vmem:[%s2722_s5] sm:$0xf] }
  0x43   :  { %547 = vmatpush.bf16.msrb.mxu2 %v1179_v10  ;;  %v1773_v10 = vld [vmem:[%s2722_s5 + $0xb4] sm:$0xf0]  ;;  %v1443_v26 = vor.u32 %v1755_v22, %v1442_v21  ;;  %v1434_v28 = vld [vmem:[%s2722_s5 + $0x10] sm:$0xf]  ;;  %v1767_v33 = vld [vmem:[%s2722_s5 + $0x84] sm:$0xf0] }
  0x44   :  { %572 = vmatpush.bf16.msra.mxu0 %v1199_v63  ;;  %v1458_v63 = vld [vmem:[%s2722_s5 + $0x40] sm:$0xf]  ;;  %v1548_v37 = vld [vmem:[%s2722_s5 + $0xf8] sm:$0xf0]  ;;  %v1540_v42 = vld [vmem:[%s2722_s5 + $0xe8] sm:$0xf0] }
  0x45   :  { %585 = vmatpush.bf16.msra.mxu1 %v1327_v3  ;;  %v1595_v3 = vor.u32 %v1793_v58, %v1594_v57  ;;  %v1459_v9 = vor.u32 %v1759_v0, %v1458_v63  ;;  %v1764_v44 = vld [vmem:[%s2722_s5 + $0x74] sm:$0xf]  ;;  %v1803_v48 = vld [vmem:[%s2722_s5 + $0x1a4] sm:$0xf0]  ;;  %v1532_v51 = vld [vmem:[%s2722_s5 + $0xd8] sm:$0xf0] }
  0x46   :  { %560 = vmatpush.bf16.msrb.mxu3 %v1307_v11  ;;  %v1450_v11 = vld [vmem:[%s2722_s5 + $0x30] sm:$0xf]  ;;  %v1789_v54 = vld [vmem:[%s2722_s5 + $0x134] sm:$0xf0]  ;;  %v1762_v56 = vld [vmem:[%s2722_s5 + $0x64] sm:$0xf] }
  0x47   :  { %v1476_v57 = vld [vmem:[%s2722_s5 + $0x68] sm:$0xf0]  ;;  %v1801_v60 = vld [vmem:[%s2722_s5 + $0x194] sm:$0xf0]  ;;  %v1468_v5 = vld [vmem:[%s2722_s5 + $0x58] sm:$0xf0] }
  0x48   :  { %573 = vmatpush.bf16.msra.mxu0 %v1183_v12  ;;  %v1757_v12 = vld [vmem:[%s2722_s5 + $0x34] sm:$0xf0]  ;;  %v1479_v58 = vor.u32 %v1762_v56, %v1476_v57  ;;  %v1524_v63 = vld [vmem:[%s2722_s5 + $0xc8] sm:$0xf0]  ;;  %v1770_v22 = vld [vmem:[%s2722_s5 + $0xa4] sm:$0xf] }
  0x49   :  { %586 = vmatpush.bf16.msra.mxu1 %v1311_v13  ;;  %v1651_v13 = vor.u32 %v1807_v4, %v1650_v2  ;;  %v1787_v2 = vld [vmem:[%s2722_s5 + $0x124] sm:$0xf0]  ;;  %v1760_v4 = vld [vmem:[%s2722_s5 + $0x54] sm:$0xf]  ;;  %v1436_v56 = vld [vmem:[%s2722_s5 + $0x18] sm:$0xf0] }
  0x4a   :  { %v1471_v6 = vor.u32 %v1760_v4, %v1468_v5  ;;  %v1588_v5 = vld [vmem:[%s2722_s5 + $0x148] sm:$0xf0]  ;;  %s1141_s17 = sshll.u32 %s2724_s7, 4  ;;  %s1142_s17 = int_to_ptr.hbm [resolvable:$true] %s1141_s17 }
  0x88   :  { %v73_v17 = vpop.f32.mrf.mxu0 }
  0x89   :  { %v74_v18 = vadd.f32 %v73_v17, %v36_v15  ;;  %v86_v19 = vpop.f32.mrf.mxu1  ;;  %v1642_v15 = vld [vmem:[%s2722_s5 + $0x1b0] sm:$0xf]  ;;  %v1515_v17 = vor.u32 %v1773_v10, %v1514_v8  ;;  %v1799_v8 = vld [vmem:[%s2722_s5 + $0x184] sm:$0xf0]  ;;  %v1772_v10 = vld [vmem:[%s2722_s5 + $0xb4] sm:$0xf] }
  0x8a   :  { %v87_v23 = vadd.f32 %v86_v19, %v37_v16  ;;  %v1805_v16 = vld [vmem:[%s2722_s5 + $0x1b4] sm:$0xf0]  ;;  %v1451_v19 = vor.u32 %v1757_v12, %v1450_v11  ;;  %v1516_v11 = vld [vmem:[%s2722_s5 + $0xb8] sm:$0xf0]  ;;  %v1812_v12 = vld [vmem:[%s2722_s5 + $0x1f4] sm:$0xf] }
  0x8b   :  { %v90_v27 = vmax.f32 %v74_v18, 0.0  ;;  %v1506_v18 = vld [vmem:[%s2722_s5 + $0xa0] sm:$0xf] }
  0x8c   :  { %v91_v30 = vmax.f32 %v87_v23, 0.0  ;;  %v1643_v23 = vor.u32 %v1805_v16, %v1642_v15  ;;  %v1507_v24 = vor.u32 %v1771_v20, %v1506_v18  ;;  %v1562_v15 = vld [vmem:[%s2722_s5 + $0x110] sm:$0xf]  ;;  %v1785_v16 = vld [vmem:[%s2722_s5 + $0x114] sm:$0xf0] }
  0x8d   :  { %v2330_v31 = vpack.c.bf16 %v90_v27, %v90_v27  ;;  %v1769_v27 = vld [vmem:[%s2722_s5 + $0x94] sm:$0xf0]  ;;  %v1563_v18 = vor.u32 %v1785_v16, %v1562_v15  ;;  %v1460_v20 = vld [vmem:[%s2722_s5 + $0x48] sm:$0xf0]  ;;  %v1628_v15 = vld [vmem:[%s2722_s5 + $0x198] sm:$0xf0] }
  0x8e   :  { %v2338_v36 = vpack.c.bf16 %v91_v30, %v91_v30  ;;  %v1499_v30 = vor.u32 %v1769_v27, %v1498_v25  ;;  %v1554_v27 = vld [vmem:[%s2722_s5 + $0x100] sm:$0xf]  ;;  %v1786_v16 = vld [vmem:[%s2722_s5 + $0x124] sm:$0xf] }
  0x8f   :  { %496 = vmatmul.bf16.vlgmr.msra.gmra.mxu2 %v2330_v31  ;;  %522 = vmatmul.bf16.vlgmr.msrb.gmra.mxu0 %v2330_v31 }
  0x90   :  { %509 = vmatmul.bf16.vlgmr.msra.gmra.mxu3 %v2338_v36  ;;  %535 = vmatmul.bf16.vlgmr.msrb.gmra.mxu1 %v2338_v36  ;;  %v75_v45 = vpop.f32.mrf.mxu0 }
  0x91   :  { %v88_v46 = vpop.f32.mrf.mxu1  ;;  %1003 = vmatpush.bf16.msra.mxu3 %v1547_v32  ;;  %990 = vmatpush.bf16.msra.mxu2 %v1483_v35  ;;  %v1435_v32 = vor.u32 %v1753_v29, %v1434_v28  ;;  %v1751_v35 = vld [vmem:[%s2722_s5 + $0x4] sm:$0xf0]  ;;  %v1484_v45 = vld [vmem:[%s2722_s5 + $0x78] sm:$0xf0] }
  0x92   :  { %1029 = vmatpush.bf16.msrb.mxu1 %v1675_v39  ;;  %1016 = vmatpush.bf16.msrb.mxu0 %v1611_v41  ;;  %v1427_v39 = vor.u32 %v1751_v35, %v1426_v34  ;;  %v1778_v41 = vld [vmem:[%s2722_s5 + $0xe4] sm:$0xf]  ;;  %v1487_v46 = vor.u32 %v1764_v44, %v1484_v45  ;;  %v1783_v28 = vld [vmem:[%s2722_s5 + $0x104] sm:$0xf0]  ;;  %v1612_v35 = vld [vmem:[%s2722_s5 + $0x178] sm:$0xf0] }
  0x93   :  { %v1543_v43 = vor.u32 %v1778_v41, %v1540_v42  ;;  %v1660_v41 = vld [vmem:[%s2722_s5 + $0x1d8] sm:$0xf0]  ;;  %v1444_v44 = vld [vmem:[%s2722_s5 + $0x28] sm:$0xf0]  ;;  %v1794_v45 = vld [vmem:[%s2722_s5 + $0x164] sm:$0xf] }
  0x95   :  { %1004 = vmatpush.bf16.msra.mxu3 %v1539_v47  ;;  %991 = vmatpush.bf16.msra.mxu2 %v1475_v50  ;;  %v1634_v47 = vld [vmem:[%s2722_s5 + $0x1a0] sm:$0xf]  ;;  %v1776_v50 = vld [vmem:[%s2722_s5 + $0xd4] sm:$0xf] }
  0x96   :  { %1030 = vmatpush.bf16.msrb.mxu1 %v1667_v53  ;;  %1017 = vmatpush.bf16.msrb.mxu0 %v1603_v55  ;;  %v1635_v49 = vor.u32 %v1803_v48, %v1634_v47  ;;  %v1535_v52 = vor.u32 %v1776_v50, %v1532_v51  ;;  %v1578_v53 = vld [vmem:[%s2722_s5 + $0x130] sm:$0xf]  ;;  %v1604_v47 = vld [vmem:[%s2722_s5 + $0x168] sm:$0xf0]  ;;  %v1806_v51 = vld [vmem:[%s2722_s5 + $0x1c4] sm:$0xf] }
  0x97   :  { %v1579_v55 = vor.u32 %v1789_v54, %v1578_v53  ;;  %v1607_v48 = vor.u32 %v1794_v45, %v1604_v47  ;;  %v1492_v50 = vld [vmem:[%s2722_s5 + $0x88] sm:$0xf0] }
  0x98   :  { %v1652_v53 = vld [vmem:[%s2722_s5 + $0x1c8] sm:$0xf0] }
  0x99   :  { %1005 = vmatpush.bf16.msra.mxu3 %v1531_v59  ;;  %992 = vmatpush.bf16.msra.mxu2 %v1467_v62  ;;  %v1626_v59 = vld [vmem:[%s2722_s5 + $0x190] sm:$0xf]  ;;  %v1774_v62 = vld [vmem:[%s2722_s5 + $0xc4] sm:$0xf]  ;;  %v1655_v54 = vor.u32 %v1806_v51, %v1652_v53 }
  0x9a   :  { %1031 = vmatpush.bf16.msrb.mxu1 %v1659_v1  ;;  %1018 = vmatpush.bf16.msrb.mxu0 %v1595_v3  ;;  %v1627_v61 = vor.u32 %v1801_v60, %v1626_v59  ;;  %v1527_v0 = vor.u32 %v1774_v62, %v1524_v63  ;;  %v1570_v1 = vld [vmem:[%s2722_s5 + $0x120] sm:$0xf]  ;;  %v1596_v59 = vld [vmem:[%s2722_s5 + $0x158] sm:$0xf0] }
  0x9b   :  { %v1571_v3 = vor.u32 %v1787_v2, %v1570_v1  ;;  %v1644_v62 = vld [vmem:[%s2722_s5 + $0x1b8] sm:$0xf0]  ;;  %v2651_v63 = vld [vmem:[%s2721_s4] sm:$0xf]  ;;  %v1750_v1 = vld [vmem:[%s2722_s5 + $0x4] sm:$0xf] }
  0x9c   :  { %v1428_v2 = vld [vmem:[%s2722_s5 + $0x8] sm:$0xf0]  ;;  %v162_v51 = vperm.slane %v2651_v63, 2 }
  0x9d   :  { %1006 = vmatpush.bf16.msra.mxu3 %v1523_v7  ;;  %993 = vmatpush.bf16.msra.mxu2 %v1459_v9  ;;  %v1618_v7 = vld [vmem:[%s2722_s5 + $0x180] sm:$0xf]  ;;  %v1431_v4 = vor.u32 %v1750_v1, %v1428_v2 }
  0x9e   :  { %1032 = vmatpush.bf16.msrb.mxu1 %v1651_v13  ;;  %1019 = vmatpush.bf16.msrb.mxu0 %v1587_v14  ;;  %v1619_v9 = vor.u32 %v1799_v8, %v1618_v7  ;;  %v1519_v13 = vor.u32 %v1772_v10, %v1516_v11  ;;  %v1676_v14 = vld [vmem:[%s2722_s5 + $0x1f8] sm:$0xf0]  ;;  %v1802_v7 = vld [vmem:[%s2722_s5 + $0x1a4] sm:$0xf]  ;;  %v1636_v8 = vld [vmem:[%s2722_s5 + $0x1a8] sm:$0xf0] }
  0x9f   :  { %548 = vmatmul.bf16.vlgmr.msrb.gmra.mxu2 %v2330_v31  ;;  %574 = vmatmul.bf16.vlgmr.msra.gmra.mxu0 %v2330_v31  ;;  %v1490_v31 = vld [vmem:[%s2722_s5 + $0x80] sm:$0xf]  ;;  %v1639_v10 = vor.u32 %v1802_v7, %v1636_v8  ;;  %v1788_v11 = vld [vmem:[%s2722_s5 + $0x134] sm:$0xf] }
  0xa0   :  { %561 = vmatmul.bf16.vlgmr.msrb.gmra.mxu3 %v2338_v36  ;;  %587 = vmatmul.bf16.vlgmr.msra.gmra.mxu1 %v2338_v36  ;;  %v1780_v36 = vld [vmem:[%s2722_s5 + $0xf4] sm:$0xf]  ;;  %v1491_v38 = vor.u32 %v1767_v33, %v1490_v31 }
  0xa1   :  { %1007 = vmatpush.bf16.msra.mxu3 %v1515_v17  ;;  %994 = vmatpush.bf16.msra.mxu2 %v1451_v19  ;;  %v1551_v40 = vor.u32 %v1780_v36, %v1548_v37  ;;  %v1679_v17 = vor.u32 %v1812_v12, %v1676_v14  ;;  %v1758_v19 = vld [vmem:[%s2722_s5 + $0x44] sm:$0xf]  ;;  %v1756_v31 = vld [vmem:[%s2722_s5 + $0x34] sm:$0xf]  ;;  %v1580_v12 = vld [vmem:[%s2722_s5 + $0x138] sm:$0xf0] }
  0xa2   :  { %1033 = vmatpush.bf16.msrb.mxu1 %v1643_v23  ;;  %1020 = vmatpush.bf16.msrb.mxu0 %v1579_v55  ;;  %v1463_v21 = vor.u32 %v1758_v19, %v1460_v20  ;;  %v1508_v23 = vld [vmem:[%s2722_s5 + $0xa8] sm:$0xf0]  ;;  %v1796_v33 = vld [vmem:[%s2722_s5 + $0x174] sm:$0xf] }
  0xa3   :  { %v1511_v25 = vor.u32 %v1770_v22, %v1508_v23  ;;  %v1615_v36 = vor.u32 %v1796_v33, %v1612_v35  ;;  %v1768_v37 = vld [vmem:[%s2722_s5 + $0x94] sm:$0xf]  ;;  %v1572_v19 = vld [vmem:[%s2722_s5 + $0x128] sm:$0xf0]  ;;  %v1798_v22 = vld [vmem:[%s2722_s5 + $0x184] sm:$0xf] }
  0xa4   :  { %v1752_v55 = vld [vmem:[%s2722_s5 + $0x14] sm:$0xf]  ;;  %v1620_v23 = vld [vmem:[%s2722_s5 + $0x188] sm:$0xf0] }
  0xa5   :  { %1008 = vmatpush.bf16.msra.mxu3 %v1507_v24  ;;  %995 = vmatpush.bf16.msra.mxu2 %v1443_v26  ;;  %v1810_v24 = vld [vmem:[%s2722_s5 + $0x1e4] sm:$0xf]  ;;  %v1668_v26 = vld [vmem:[%s2722_s5 + $0x1e8] sm:$0xf0]  ;;  %v1439_v57 = vor.u32 %v1752_v55, %v1436_v56  ;;  %v1800_v14 = vld [vmem:[%s2722_s5 + $0x194] sm:$0xf] }
  0xa6   :  { %1034 = vmatpush.bf16.msrb.mxu1 %v1635_v49  ;;  %1021 = vmatpush.bf16.msrb.mxu0 %v1571_v3  ;;  %v1671_v29 = vor.u32 %v1810_v24, %v1668_v26  ;;  %v1766_v49 = vld [vmem:[%s2722_s5 + $0x84] sm:$0xf]  ;;  %v1575_v24 = vor.u32 %v1786_v16, %v1572_v19  ;;  %v160_v26 = vperm.slane %v2651_v63, 0 }
  0xa7   :  { %v1790_v3 = vld [vmem:[%s2722_s5 + $0x144] sm:$0xf] }
  0xa9   :  { %1009 = vmatpush.bf16.msra.mxu3 %v1499_v30  ;;  %996 = vmatpush.bf16.msra.mxu2 %v1435_v32  ;;  %v1555_v30 = vor.u32 %v1783_v28, %v1554_v27  ;;  %v1452_v32 = vld [vmem:[%s2722_s5 + $0x38] sm:$0xf0]  ;;  %v1784_v27 = vld [vmem:[%s2722_s5 + $0x114] sm:$0xf] }
  0xaa   :  { %1035 = vmatpush.bf16.msrb.mxu1 %v1627_v61  ;;  %1022 = vmatpush.bf16.msrb.mxu0 %v1563_v18  ;;  %v1455_v34 = vor.u32 %v1756_v31, %v1452_v32  ;;  %v1804_v61 = vld [vmem:[%s2722_s5 + $0x1b4] sm:$0xf]  ;;  %v1631_v18 = vor.u32 %v1800_v14, %v1628_v15  ;;  %v1564_v28 = vld [vmem:[%s2722_s5 + $0x118] sm:$0xf0] }
  0xab   :  { %v1567_v32 = vor.u32 %v1784_v27, %v1564_v28 }
  0xad   :  { %1010 = vmatpush.bf16.msra.mxu3 %v1491_v38  ;;  %997 = vmatpush.bf16.msra.mxu2 %v1427_v39  ;;  %v1500_v38 = vld [vmem:[%s2722_s5 + $0x98] sm:$0xf0]  ;;  %v1808_v39 = vld [vmem:[%s2722_s5 + $0x1d4] sm:$0xf] }
  0xae   :  { %1036 = vmatpush.bf16.msrb.mxu1 %v1619_v9  ;;  %1023 = vmatpush.bf16.msrb.mxu0 %v1555_v30  ;;  %v1663_v42 = vor.u32 %v1808_v39, %v1660_v41  ;;  %v161_v9 = vperm.slane %v2651_v63, 1  ;;  %v1782_v39 = vld [vmem:[%s2722_s5 + $0x104] sm:$0xf] }
  0xb1   :  { %1055 = vmatpush.bf16.msrb.mxu3 %v1551_v40  ;;  %1042 = vmatpush.bf16.msrb.mxu2 %v1487_v46  ;;  %v1503_v40 = vor.u32 %v1768_v37, %v1500_v38 }
  0xb2   :  { %1081 = vmatpush.bf16.msra.mxu1 %v1679_v17  ;;  %1068 = vmatpush.bf16.msra.mxu0 %v1615_v36 }
  0xb5   :  { %1056 = vmatpush.bf16.msrb.mxu3 %v1543_v43  ;;  %1043 = vmatpush.bf16.msrb.mxu2 %v1479_v58  ;;  %v1754_v43 = vld [vmem:[%s2722_s5 + $0x24] sm:$0xf]  ;;  %v1792_v58 = vld [vmem:[%s2722_s5 + $0x154] sm:$0xf] }
  0xb6   :  { %1082 = vmatpush.bf16.msra.mxu1 %v1671_v29  ;;  %v1447_v46 = vor.u32 %v1754_v43, %v1444_v44  ;;  %1069 = vmatpush.bf16.msra.mxu0 %v1607_v48  ;;  %v1599_v60 = vor.u32 %v1792_v58, %v1596_v59  ;;  %v1623_v29 = vor.u32 %v1798_v22, %v1620_v23  ;;  %v163_v44 = vperm.slane %v2651_v63, 3  ;;  %v664_v63 = vld [vmem:[%s2723_s6] sm:$0x3]  ;;  %s1849_s6 = smov [#allocation2]  }
  0xb7   :  { %v667_v16 = vperm.slane %v664_v63, 1  ;;  %s1139_s14 = sshll.u32 %s1849_s6, 4  ;;  %s1140_s14 = int_to_ptr.vmem [resolvable:$true] %s1139_s14 }
  0xb9   :  { %1057 = vmatpush.bf16.msrb.mxu3 %v1535_v52  ;;  %1044 = vmatpush.bf16.msrb.mxu2 %v1471_v6  ;;  %v1495_v52 = vor.u32 %v1766_v49, %v1492_v50  ;;  %v1591_v6 = vor.u32 %v1790_v3, %v1588_v5  ;;  %v666_v3 = vperm.slane %v664_v63, 0 }
  0xba   :  { %1083 = vmatpush.bf16.msra.mxu1 %v1663_v42  ;;  %1070 = vmatpush.bf16.msra.mxu0 %v1599_v60 }
  0xbd   :  { %1058 = vmatpush.bf16.msrb.mxu3 %v1527_v0  ;;  %1045 = vmatpush.bf16.msrb.mxu2 %v1463_v21  ;;  %v1647_v0 = vor.u32 %v1804_v61, %v1644_v62 }
  0xbe   :  { %1084 = vmatpush.bf16.msra.mxu1 %v1655_v54  ;;  %1071 = vmatpush.bf16.msra.mxu0 %v1591_v6 }
  0xc1   :  { %1059 = vmatpush.bf16.msrb.mxu3 %v1519_v13  ;;  %1046 = vmatpush.bf16.msrb.mxu2 %v1455_v34  ;;  %v1583_v13 = vor.u32 %v1788_v11, %v1580_v12 }
  0xc2   :  { %1085 = vmatpush.bf16.msra.mxu1 %v1647_v0 }
  0xc3   :  { %1072 = vmatpush.bf16.msra.mxu0 %v1583_v13 }
  0xc5   :  { %1060 = vmatpush.bf16.msrb.mxu3 %v1511_v25  ;;  %1047 = vmatpush.bf16.msrb.mxu2 %v1447_v46 }
  0xc6   :  { %1086 = vmatpush.bf16.msra.mxu1 %v1639_v10 }
  0xc7   :  { %1073 = vmatpush.bf16.msra.mxu0 %v1575_v24 }
  0xc9   :  { %1061 = vmatpush.bf16.msrb.mxu3 %v1503_v40  ;;  %1048 = vmatpush.bf16.msrb.mxu2 %v1439_v57  ;;  %v1556_v40 = vld [vmem:[%s2722_s5 + $0x108] sm:$0xf0] }
  0xca   :  { %1087 = vmatpush.bf16.msra.mxu1 %v1631_v18  ;;  %v1559_v41 = vor.u32 %v1782_v39, %v1556_v40 }
  0xcb   :  { %1074 = vmatpush.bf16.msra.mxu0 %v1567_v32 }
  0xcd   :  { %1062 = vmatpush.bf16.msrb.mxu3 %v1495_v52  ;;  %1049 = vmatpush.bf16.msrb.mxu2 %v1431_v4 }
  0xce   :  { %1088 = vmatpush.bf16.msra.mxu1 %v1623_v29 }
  0xcf   :  { %1075 = vmatpush.bf16.msra.mxu0 %v1559_v41 }
 0x10c   :  { %v523_v17 = vpop.f32.mrf.mxu0 }
 0x10d   :  { %v524_v20 = vadd.f32 %v523_v17, %v161_v9  ;;  %v536_v21 = vpop.f32.mrf.mxu1 }
 0x10f   :  { %v537_v25 = vadd.f32 %v536_v21, %v524_v20 }
 0x111   :  { %v593_v30 = vmax.f32 %v537_v25, 0.0 }
 0x112   :  { %v497_v31 = vpop.f32.mrf.mxu2 }
 0x113   :  { %v597_v33 = vpack.c.bf16 %v593_v30, %v593_v30  ;;  %v498_v34 = vadd.f32 %v497_v31, %v160_v26  ;;  %v510_v35 = vpop.f32.mrf.mxu3 }
 0x114   :  { %v525_v36 = vpop.f32.mrf.mxu0 }
 0x115   :  { %v511_v37 = vadd.f32 %v510_v35, %v498_v34  ;;  %v538_v38 = vpop.f32.mrf.mxu1  ;;  %1011 = vmatmul.bf16.vlgmr.msra.gmra.mxu3 %v597_v33 }
 0x117   :  { %v592_v42 = vmax.f32 %v511_v37, 0.0 }
 0x119   :  { %v596_v43 = vpack.c.bf16 %v592_v42, %v592_v42 }
 0x11a   :  { %v499_v45 = vpop.f32.mrf.mxu2 }
 0x11b   :  { %v512_v46 = vpop.f32.mrf.mxu3  ;;  %998 = vmatmul.bf16.vlgmr.msra.gmra.mxu2 %v596_v43 }
 0x11c   :  { %v575_v47 = vpop.f32.mrf.mxu0 }
 0x11d   :  { %v576_v48 = vadd.f32 %v575_v47, %v163_v44  ;;  %v588_v49 = vpop.f32.mrf.mxu1 }
 0x11f   :  { %v589_v50 = vadd.f32 %v588_v49, %v576_v48 }
 0x121   :  { %v595_v52 = vmax.f32 %v589_v50, 0.0 }
 0x122   :  { %v549_v53 = vpop.f32.mrf.mxu2 }
 0x123   :  { %v599_v54 = vpack.c.bf16 %v595_v52, %v595_v52  ;;  %v550_v55 = vadd.f32 %v549_v53, %v162_v51  ;;  %v562_v56 = vpop.f32.mrf.mxu3 }
 0x124   :  { %v577_v57 = vpop.f32.mrf.mxu0 }
 0x125   :  { %v563_v58 = vadd.f32 %v562_v56, %v550_v55  ;;  %v590_v59 = vpop.f32.mrf.mxu1  ;;  %1037 = vmatmul.bf16.vlgmr.msrb.gmra.mxu1 %v599_v54  ;;  %1063 = vmatmul.bf16.vlgmr.msrb.gmra.mxu3 %v597_v33 }
 0x127   :  { %v594_v60 = vmax.f32 %v563_v58, 0.0 }
 0x129   :  { %v598_v61 = vpack.c.bf16 %v594_v60, %v594_v60 }
 0x12a   :  { %v551_v62 = vpop.f32.mrf.mxu2 }
 0x12b   :  { %v564_v0 = vpop.f32.mrf.mxu3  ;;  %1024 = vmatmul.bf16.vlgmr.msrb.gmra.mxu0 %v598_v61  ;;  %1050 = vmatmul.bf16.vlgmr.msrb.gmra.mxu2 %v596_v43 }
 0x135   :  { %1089 = vmatmul.bf16.vlgmr.msra.gmra.mxu1 %v599_v54 }
 0x13b   :  { %1076 = vmatmul.bf16.vlgmr.msra.gmra.mxu0 %v598_v61 }
 0x198   :  { %v1012_v1 = vpop.f32.mrf.mxu3 }
 0x19e   :  { %v999_v2 = vpop.f32.mrf.mxu2 }
 0x19f   :  { %v1000_v6 = vadd.f32 %v999_v2, %v666_v3 }
 0x1a0   :  { %v1014_v4 = vpop.f32.mrf.mxu3 }
 0x1a1   :  { %v1013_v8 = vadd.f32 %v1012_v1, %v1000_v6 }
 0x1a2   :  { %v1038_v5 = vpop.f32.mrf.mxu1 }
 0x1a6   :  { %v1001_v7 = vpop.f32.mrf.mxu2 }
 0x1a8   :  { %v1025_v9 = vpop.f32.mrf.mxu0  ;;  %v1064_v10 = vpop.f32.mrf.mxu3 }
 0x1a9   :  { %v1026_v11 = vadd.f32 %v1025_v9, %v1013_v8 }
 0x1aa   :  { %v1040_v12 = vpop.f32.mrf.mxu1 }
 0x1ab   :  { %v1039_v13 = vadd.f32 %v1038_v5, %v1026_v11 }
 0x1ad   :  { %v1680_v14 = vmul.f32 -1.442695, %v1039_v13 }
 0x1ae   :  { %v1051_v15 = vpop.f32.mrf.mxu2 }
 0x1af   :  { %1815 = vpow2.f32 %v1680_v14  ;;  %v1052_v20 = vadd.f32 %v1051_v15, %v667_v16 }
 0x1b0   :  { %v1027_v17 = vpop.f32.mrf.mxu0  ;;  %v1066_v18 = vpop.f32.mrf.mxu3 }
 0x1b1   :  { %v1065_v24 = vadd.f32 %v1064_v10, %v1052_v20 }
 0x1b2   :  { %v1090_v19 = vpop.f32.mrf.mxu1 }
 0x1b5   :  { %v1816_v21 = vpop.eup %1815 }
 0x1b6   :  { %v1100_v22 = vadd.f32 1.0, %v1816_v21  ;;  %v1053_v23 = vpop.f32.mrf.mxu2 }
 0x1b8   :  { %1817 = vrcp.f32 %v1100_v22  ;;  %v1077_v25 = vpop.f32.mrf.mxu0  ;;  %v1113_v34 = vand.u32 2147483648, %v1100_v22  ;;  %v1111_v36 = vand.u32 2147483647, %v1100_v22  ;;  %vm1107_vm2 = vweird.f32 %v1100_v22 }
 0x1b9   :  { %v1078_v26 = vadd.f32 %v1077_v25, %v1065_v24 }
 0x1ba   :  { %v1092_v27 = vpop.f32.mrf.mxu1  ;;  %v1114_v40 = vor.u32 1.1754944e-38, %v1113_v34  ;;  %vm1112_vm4 = vcmp.eq.f32.partialorder %v1111_v36, 8.507059e+37 }
 0x1bb   :  { %v1091_v28 = vadd.f32 %v1090_v19, %v1078_v26 }
 0x1bd   :  { %v1681_v29 = vmul.f32 -1.442695, %v1091_v28 }
 0x1be   :  { %v1818_v30 = vpop.eup %1817 }
 0x1bf   :  { %1819 = vpow2.f32 %v1681_v29  ;;  %v1103_v31 = vmul.f32 %v1818_v30, %v1100_v22  ;;  %vm1108_vm1 = vweird.f32 %v1818_v30 }
 0x1c0   :  { %v1079_v32 = vpop.f32.mrf.mxu0  ;;  %vm1109_vm3 = vmor %vm1107_vm2, %vm1108_vm1 }
 0x1c1   :  { %v1104_v33 = vsub.f32 1.0, %v1103_v31 }
 0x1c3   :  { %v1105_v35 = vmul.f32 %v1818_v30, %v1104_v33 }
 0x1c5   :  { %v1820_v37 = vpop.eup %1819  ;;  %v1106_v38 = vadd.f32 %v1818_v30, %v1105_v35 }
 0x1c6   :  { %v1101_v39 = vadd.f32 1.0, %v1820_v37 }
 0x1c7   :  { %v1110_v41 = vsel %vm1109_vm3, %v1818_v30, %v1106_v38 }
 0x1c8   :  { %1821 = vrcp.f32 %v1101_v39  ;;  %v1115_v42 = vsel %vm1112_vm4, %v1114_v40, %v1110_v41  ;;  %v1128_v46 = vand.u32 2147483648, %v1101_v39  ;;  %v1126_v48 = vand.u32 2147483647, %v1101_v39 }
 0x1c9   :  { %1132 = vst [vmem:[#allocation2] sm:$0xff] %v1115_v42  ;;  %vm1122_vm6 = vweird.f32 %v1101_v39 }
 0x1ca   :  { %v1129_v50 = vor.u32 1.1754944e-38, %v1128_v46  ;;  %vm1127_vm8 = vcmp.eq.f32.partialorder %v1126_v48, 8.507059e+37 }
 0x1ce   :  { %v1822_v43 = vpop.eup %1821 }
 0x1cf   :  { %v1118_v44 = vmul.f32 %v1822_v43, %v1101_v39  ;;  %vm1123_vm5 = vweird.f32 %v1822_v43 }
 0x1d0   :  { %vm1124_vm7 = vmor %vm1122_vm6, %vm1123_vm5 }
 0x1d1   :  { %v1119_v45 = vsub.f32 1.0, %v1118_v44 }
 0x1d3   :  { %v1120_v47 = vmul.f32 %v1822_v43, %v1119_v45 }
 0x1d5   :  { %v1121_v49 = vadd.f32 %v1822_v43, %v1120_v47 }
 0x1d7   :  { %v1125_v51 = vsel %vm1124_vm7, %v1822_v43, %v1121_v49 }
 0x1d8   :  { %v1130_v52 = vsel %vm1127_vm8, %v1129_v50, %v1125_v51 }
 0x1d9   :  { %1133 = vst [vmem:[#allocation2 + $0x8] sm:$0xff] %v1130_v52 }
 0x1da   :  { %1144 = dma.vmem_to_hbm [thread:$0]  %s1140_s14, 256, %s1142_s17, [#allocation3]  }
 0x1db   :  { %1847 = dma.done.wait [#allocation3], 256  }
 0x1dc   :  { %1848 = vsyncadd [#allocation3], 4294967040 }
 0x1dd   :  { %1149 = vsyncpa [#allocation3], 1 }

</bundles_post_ra>
